<compile_context>
chip_gen: v7x
topology: tpu7x:2x2x1
jax: 0.10.0
libtpu: 0.0.40
codegen_flags: <defaults>
</compile_context>

<pallas_src>
import functools

import jax
import jax.numpy as jnp
from jax import lax
from jax.experimental import pallas as pl
from jax.experimental.pallas import tpu as pltpu


# ----------------------------------------------------------------------------
# Kernel
# ----------------------------------------------------------------------------
def _boundary_kernel(probs_ref, labels_ref, out_ref, *, bt, hp, wp, h, w,
                     smooth, padded):
    # probs_ref / labels_ref: (bt, hp, wp) slab = bt batch planes of one class.
    # out_ref: (8, wp) lane-dense partial-sum tile for this (class, batch) block.
    rows = bt * hp
    p = probs_ref[...].reshape(rows, wp)    # probs  planes -> "G_gt"
    l = labels_ref[...].reshape(rows, wp)   # labels planes -> "G_result"

    # Boundary masks: built once, reused by all 12 shifts of both tensors.
    rm = lax.broadcasted_iota(jnp.int32, (bt, hp, wp), 1).reshape(rows, wp)
    cm = lax.broadcasted_iota(jnp.int32, (rows, wp), 1)
    m_row_p = rm != 0          # source row r-1 exists inside this plane
    m_row_n = rm != (h - 1)    # source row r+1 is inside the original image
    m_col_p = cm != 0          # source col c-1 exists
    m_col_n = cm != (w - 1)    # source col c+1 is inside the original image

    def shift(x, delta, axis, mask):
        # y[..., j, ...] = x[..., j-delta, ...], zero fill (XLU roll + mask).
        y = pltpu.roll(x, shift=delta % x.shape[axis], axis=axis)
        return jnp.where(mask, y, 0.0)

    def sobel_mag(x):
        # Separable 3x3 Sobel, |grad| = sqrt(Gx^2 + Gy^2 + smooth).
        dn = shift(x, +1, 0, m_row_p)          # x[r-1, c]
        up = shift(x, -1, 0, m_row_n)          # x[r+1, c]
        v = dn + 2.0 * x + up                  # column filter [1, 2, 1]
        d = dn - up                            # column filter [1, 0, -1]
        gx = shift(v, +1, 1, m_col_p) - shift(v, -1, 1, m_col_n)
        gy = shift(d, +1, 1, m_col_p) + 2.0 * d + shift(d, -1, 1, m_col_n)
        return jnp.sqrt(gx * gx + gy * gy + smooth)

    diff = sobel_mag(l) - sobel_mag(p)
    d2 = diff * diff
    if padded:
        # Exclude the zero-padded region (rows >= h, cols >= w) from the loss.
        d2 = jnp.where(jnp.logical_and(rm < h, cm < w), d2, 0.0)

    # Fold to an (8, wp) lane-dense tile using only leading-axis (elementwise
    # VALU) adds -- no in-kernel cross-lane XLU reduce, no jnp.full broadcast.
    out_ref[...] = d2.reshape(rows // 8, 8, wp).sum(axis=0)


# ----------------------------------------------------------------------------
# Wrapper
# ----------------------------------------------------------------------------
def _round_up(x, m):
    return ((x + m - 1) // m) * m


def _vmem_capacity_bytes():
    try:
        return int(pltpu.get_tpu_info().vmem_capacity_bytes)
    except Exception:
        return 64 * 1024 * 1024            # conservative: v7x per-TC VMEM


def _choose_batch_tile(B, C, plane_bytes, max_block_bytes):
    divisors = [d for d in range(1, B + 1) if B % d == 0]
    if (C - 1) == 1 and B >= 2:
        # Keep the grid's parallel extent >= 2 so v7x can use both TensorCores.
        divisors = [d for d in divisors if (B // d) >= 2] or [1]
    fitting = [d for d in divisors if d * plane_bytes <= max_block_bytes]
    return max(fitting) if fitting else min(divisors)


def boundary_loss(probs, labels, smooth=1e-6):
    """probs, labels: (B, C, H, W) float32 (NCHW). Returns scalar f32."""
    B, C, H, W = probs.shape
    assert labels.shape == probs.shape
    if C < 2:                      # torch loop `for i in range(1, C)` is empty
        return jnp.float32(0.0)

    probs = probs.astype(jnp.float32)
    labels = labels.astype(jnp.float32)

    # Pad H/W to native-tile multiples so the kernel always takes the single
    # roll+mask path; padded pixels are masked out of the loss in-kernel.
    Hp, Wp = _round_up(H, 8), _round_up(W, 128)
    padded = (Hp != H) or (Wp != W)
    if padded:
        # TODO(synk): for large unaligned W an in-kernel lane-masked shift path
        # would avoid this extra HBM pass; irrelevant at these small sizes.
        pad_cfg = ((0, 0), (0, 0), (0, Hp - H), (0, Wp - W))
        probs = jnp.pad(probs, pad_cfg)
        labels = jnp.pad(labels, pad_cfg)

    # Generation-aware VMEM budget (v7x: 64 MiB physical; v5e/v6e: 128 MiB).
    vmem_cap = _vmem_capacity_bytes()
    vmem_hi = (vmem_cap * 3) // 4
    headroom = 8 * 1024 * 1024
    max_block_bytes = max(256 * 1024, (vmem_hi - headroom) // 16)

    plane_bytes = Hp * Wp * 4
    Bt = _choose_batch_tile(B, C, plane_bytes, max_block_bytes)
    Bb = B // Bt
    block_bytes = Bt * plane_bytes
    vmem_limit = int(min(vmem_hi,
                         max(32 * 1024 * 1024, 16 * block_bytes + headroom)))

    kernel = functools.partial(
        _boundary_kernel, bt=Bt, hp=Hp, wp=Wp, h=H, w=W,
        smooth=float(smooth), padded=padded)

    in_block = (Bt, pl.Squeezed(), Hp, Wp)        # (batch tile, 1 class, H, W)
    out_block = (pl.Squeezed(), pl.Squeezed(), 8, Wp)

    partial = pl.pallas_call(
        kernel,
        out_shape=jax.ShapeDtypeStruct((C - 1, Bb, 8, Wp), jnp.float32),
        grid_spec=pltpu.PrefetchScalarGridSpec(
            num_scalar_prefetch=0,
            grid=(C - 1, Bb),                     # class 0 never read (ci + 1)
            in_specs=[
                pl.BlockSpec(in_block, lambda ci, bi: (bi, ci + 1, 0, 0)),
                pl.BlockSpec(in_block, lambda ci, bi: (bi, ci + 1, 0, 0)),
            ],
            out_specs=pl.BlockSpec(out_block, lambda ci, bi: (ci, bi, 0, 0))),
        compiler_params=pltpu.CompilerParams(
            dimension_semantics=("parallel", "parallel"),
            vmem_limit_bytes=vmem_limit),
    )(probs, labels)

    # sum_i MSE_i == (total SSE over classes 1..C-1 and batch) / (B*H*W).
    return jnp.sum(partial) / jnp.float32(B * H * W)


# ----------------------------------------------------------------------------
# Pure-JAX reference (mirrors the PyTorch module)
# ----------------------------------------------------------------------------
def _reference_boundary_loss(probs, labels, smooth=1e-6):
    a = jnp.array([[1, 0, -1], [2, 0, -2], [1, 0, -1]], jnp.float32)
    b = jnp.array([[1, 2, 1], [0, 0, 0], [-1, -2, -1]], jnp.float32)
    wa = a[None, None]  # OIHW
    wb = b[None, None]

    def conv(x, w):
        return lax.conv_general_dilated(
            x, w, window_strides=(1, 1), padding=((1, 1), (1, 1)),
            dimension_numbers=("NCHW", "OIHW", "NCHW"))

    total = 0.0
    C = probs.shape[1]
    for i in range(1, C):
        y = probs[:, i:i + 1]
        x = labels[:, i:i + 1]
        g_res = jnp.sqrt(conv(x, wa) ** 2 + conv(x, wb) ** 2 + smooth)
        g_gt = jnp.sqrt(conv(y, wa) ** 2 + conv(y, wb) ** 2 + smooth)
        total = total + jnp.mean((g_res - g_gt) ** 2)
    return total


def _make_inputs(key, B, C, H, W):
    k1, k2 = jax.random.split(key)
    logits = jax.random.normal(k1, (B, C, H, W), jnp.float32)
    probs = jax.nn.softmax(logits, axis=1)
    cls = jax.random.randint(k2, (B, H, W), 0, C)
    labels = jax.nn.one_hot(cls, C, axis=1).astype(jnp.float32)
    return probs, labels


if __name__ == "__main__":
    key = jax.random.PRNGKey(0)
    k1, k2, k3 = jax.random.split(key, 3)

    cases = [
        (k1, 2, 4, 16, 16),    # nominal small shape (pads W 16 -> 128)
        (k2, 2, 3, 16, 128),   # already (8,128)-aligned (no padding path)
        (k3, 4, 2, 12, 16),    # single foreground class, pads H and W, Bt > 1
    ]
    for k, B, C, H, W in cases:
        probs, labels = _make_inputs(k, B, C, H, W)
        out = jax.block_until_ready(boundary_loss(probs, labels))
        ref = jax.block_until_ready(_reference_boundary_loss(probs, labels))
        assert jnp.allclose(out, ref, rtol=1e-4, atol=1e-5), (B, C, H, W, out, ref)

    print("KERNEL_OK")
</pallas_src>

<mosaic_0001>
module attributes {stable_mosaic.version = 11 : i64} {
  func.func @_boundary_kernel(%arg0: i32, %arg1: i32, %arg2: memref<2x1x16x128xf32, #tpu.memory_space<vmem>>, %arg3: memref<2x1x16x128xf32, #tpu.memory_space<vmem>>, %arg4: memref<1x1x8x128xf32, #tpu.memory_space<vmem>>) attributes {dimension_semantics = [#tpu.dimension_semantics<parallel>, #tpu.dimension_semantics<parallel>], iteration_bounds = array<i64: 3, 1>, scalar_prefetch = 0 : i64, scratch_operands = 0 : i64, tpu.core_type = #tpu.core_type<tc>, window_params = [{transform_indices = @transform_0, window_bounds = array<i64: 2, 1, 16, 128>}, {transform_indices = @transform_1, window_bounds = array<i64: 2, 1, 16, 128>}, {transform_indices = @transform_2, window_bounds = array<i64: 1, 1, 8, 128>}]} {
    %c0 = arith.constant 0 : index
    %c0_0 = arith.constant 0 : index
    %c0_1 = arith.constant 0 : index
    %c0_2 = arith.constant 0 : index
    %0 = vector.load %arg2[%c0, %c0_0, %c0_1, %c0_2] : memref<2x1x16x128xf32, #tpu.memory_space<vmem>>, vector<2x1x16x128xf32>
    %1 = vector.shape_cast %0 : vector<2x1x16x128xf32> to vector<2x16x128xf32>
    %2 = vector.shape_cast %1 : vector<2x16x128xf32> to vector<32x128xf32>
    %c0_3 = arith.constant 0 : index
    %c0_4 = arith.constant 0 : index
    %c0_5 = arith.constant 0 : index
    %c0_6 = arith.constant 0 : index
    %3 = vector.load %arg3[%c0_3, %c0_4, %c0_5, %c0_6] : memref<2x1x16x128xf32, #tpu.memory_space<vmem>>, vector<2x1x16x128xf32>
    %4 = vector.shape_cast %3 : vector<2x1x16x128xf32> to vector<2x16x128xf32>
    %5 = vector.shape_cast %4 : vector<2x16x128xf32> to vector<32x128xf32>
    %6 = tpu.iota {dimensions = array<i32: 1>} : vector<2x16x128xi32>
    %7 = vector.shape_cast %6 : vector<2x16x128xi32> to vector<32x128xi32>
    %8 = tpu.iota {dimensions = array<i32: 1>} : vector<32x128xi32>
    %c0_i32 = arith.constant 0 : i32
    %9 = vector.broadcast %c0_i32 : i32 to vector<32x128xi32>
    %10 = arith.cmpi ne, %7, %9 : vector<32x128xi32>
    %c15_i32 = arith.constant 15 : i32
    %11 = vector.broadcast %c15_i32 : i32 to vector<32x128xi32>
    %12 = arith.cmpi ne, %7, %11 : vector<32x128xi32>
    %c0_i32_7 = arith.constant 0 : i32
    %13 = vector.broadcast %c0_i32_7 : i32 to vector<32x128xi32>
    %14 = arith.cmpi ne, %8, %13 : vector<32x128xi32>
    %c15_i32_8 = arith.constant 15 : i32
    %15 = vector.broadcast %c15_i32_8 : i32 to vector<32x128xi32>
    %16 = arith.cmpi ne, %8, %15 : vector<32x128xi32>
    %c1_i32 = arith.constant 1 : i32
    %17 = tpu.dynamic_rotate %5 by %c1_i32 dim 0 : vector<32x128xf32>, i32 -> vector<32x128xf32>
    %cst = arith.constant 0.000000e+00 : f32
    %18 = vector.broadcast %cst : f32 to vector<32x128xf32>
    %19 = arith.select %10, %17, %18 : vector<32x128xi1>, vector<32x128xf32>
    %c31_i32 = arith.constant 31 : i32
    %20 = tpu.dynamic_rotate %5 by %c31_i32 dim 0 : vector<32x128xf32>, i32 -> vector<32x128xf32>
    %cst_9 = arith.constant 0.000000e+00 : f32
    %21 = vector.broadcast %cst_9 : f32 to vector<32x128xf32>
    %22 = arith.select %12, %20, %21 : vector<32x128xi1>, vector<32x128xf32>
    %cst_10 = arith.constant 2.000000e+00 : f32
    %23 = vector.broadcast %cst_10 : f32 to vector<32x128xf32>
    %24 = arith.mulf %23, %5 : vector<32x128xf32>
    %25 = arith.addf %19, %24 : vector<32x128xf32>
    %26 = arith.addf %25, %22 : vector<32x128xf32>
    %27 = arith.subf %19, %22 : vector<32x128xf32>
    %c1_i32_11 = arith.constant 1 : i32
    %28 = tpu.dynamic_rotate %26 by %c1_i32_11 dim 1 : vector<32x128xf32>, i32 -> vector<32x128xf32>
    %cst_12 = arith.constant 0.000000e+00 : f32
    %29 = vector.broadcast %cst_12 : f32 to vector<32x128xf32>
    %30 = arith.select %14, %28, %29 : vector<32x128xi1>, vector<32x128xf32>
    %c127_i32 = arith.constant 127 : i32
    %31 = tpu.dynamic_rotate %26 by %c127_i32 dim 1 : vector<32x128xf32>, i32 -> vector<32x128xf32>
    %cst_13 = arith.constant 0.000000e+00 : f32
    %32 = vector.broadcast %cst_13 : f32 to vector<32x128xf32>
    %33 = arith.select %16, %31, %32 : vector<32x128xi1>, vector<32x128xf32>
    %34 = arith.subf %30, %33 : vector<32x128xf32>
    %c1_i32_14 = arith.constant 1 : i32
    %35 = tpu.dynamic_rotate %27 by %c1_i32_14 dim 1 : vector<32x128xf32>, i32 -> vector<32x128xf32>
    %cst_15 = arith.constant 0.000000e+00 : f32
    %36 = vector.broadcast %cst_15 : f32 to vector<32x128xf32>
    %37 = arith.select %14, %35, %36 : vector<32x128xi1>, vector<32x128xf32>
    %cst_16 = arith.constant 2.000000e+00 : f32
    %38 = vector.broadcast %cst_16 : f32 to vector<32x128xf32>
    %39 = arith.mulf %38, %27 : vector<32x128xf32>
    %40 = arith.addf %37, %39 : vector<32x128xf32>
    %c127_i32_17 = arith.constant 127 : i32
    %41 = tpu.dynamic_rotate %27 by %c127_i32_17 dim 1 : vector<32x128xf32>, i32 -> vector<32x128xf32>
    %cst_18 = arith.constant 0.000000e+00 : f32
    %42 = vector.broadcast %cst_18 : f32 to vector<32x128xf32>
    %43 = arith.select %16, %41, %42 : vector<32x128xi1>, vector<32x128xf32>
    %44 = arith.addf %40, %43 : vector<32x128xf32>
    %45 = arith.mulf %34, %34 : vector<32x128xf32>
    %46 = arith.mulf %44, %44 : vector<32x128xf32>
    %47 = arith.addf %45, %46 : vector<32x128xf32>
    %cst_19 = arith.constant 9.99999997E-7 : f32
    %48 = vector.broadcast %cst_19 : f32 to vector<32x128xf32>
    %49 = arith.addf %47, %48 : vector<32x128xf32>
    %50 = math.sqrt %49 : vector<32x128xf32>
    %c1_i32_20 = arith.constant 1 : i32
    %51 = tpu.dynamic_rotate %2 by %c1_i32_20 dim 0 : vector<32x128xf32>, i32 -> vector<32x128xf32>
    %cst_21 = arith.constant 0.000000e+00 : f32
    %52 = vector.broadcast %cst_21 : f32 to vector<32x128xf32>
    %53 = arith.select %10, %51, %52 : vector<32x128xi1>, vector<32x128xf32>
    %c31_i32_22 = arith.constant 31 : i32
    %54 = tpu.dynamic_rotate %2 by %c31_i32_22 dim 0 : vector<32x128xf32>, i32 -> vector<32x128xf32>
    %cst_23 = arith.constant 0.000000e+00 : f32
    %55 = vector.broadcast %cst_23 : f32 to vector<32x128xf32>
    %56 = arith.select %12, %54, %55 : vector<32x128xi1>, vector<32x128xf32>
    %cst_24 = arith.constant 2.000000e+00 : f32
    %57 = vector.broadcast %cst_24 : f32 to vector<32x128xf32>
    %58 = arith.mulf %57, %2 : vector<32x128xf32>
    %59 = arith.addf %53, %58 : vector<32x128xf32>
    %60 = arith.addf %59, %56 : vector<32x128xf32>
    %61 = arith.subf %53, %56 : vector<32x128xf32>
    %c1_i32_25 = arith.constant 1 : i32
    %62 = tpu.dynamic_rotate %60 by %c1_i32_25 dim 1 : vector<32x128xf32>, i32 -> vector<32x128xf32>
    %cst_26 = arith.constant 0.000000e+00 : f32
    %63 = vector.broadcast %cst_26 : f32 to vector<32x128xf32>
    %64 = arith.select %14, %62, %63 : vector<32x128xi1>, vector<32x128xf32>
    %c127_i32_27 = arith.constant 127 : i32
    %65 = tpu.dynamic_rotate %60 by %c127_i32_27 dim 1 : vector<32x128xf32>, i32 -> vector<32x128xf32>
    %cst_28 = arith.constant 0.000000e+00 : f32
    %66 = vector.broadcast %cst_28 : f32 to vector<32x128xf32>
    %67 = arith.select %16, %65, %66 : vector<32x128xi1>, vector<32x128xf32>
    %68 = arith.subf %64, %67 : vector<32x128xf32>
    %c1_i32_29 = arith.constant 1 : i32
    %69 = tpu.dynamic_rotate %61 by %c1_i32_29 dim 1 : vector<32x128xf32>, i32 -> vector<32x128xf32>
    %cst_30 = arith.constant 0.000000e+00 : f32
    %70 = vector.broadcast %cst_30 : f32 to vector<32x128xf32>
    %71 = arith.select %14, %69, %70 : vector<32x128xi1>, vector<32x128xf32>
    %cst_31 = arith.constant 2.000000e+00 : f32
    %72 = vector.broadcast %cst_31 : f32 to vector<32x128xf32>
    %73 = arith.mulf %72, %61 : vector<32x128xf32>
    %74 = arith.addf %71, %73 : vector<32x128xf32>
    %c127_i32_32 = arith.constant 127 : i32
    %75 = tpu.dynamic_rotate %61 by %c127_i32_32 dim 1 : vector<32x128xf32>, i32 -> vector<32x128xf32>
    %cst_33 = arith.constant 0.000000e+00 : f32
    %76 = vector.broadcast %cst_33 : f32 to vector<32x128xf32>
    %77 = arith.select %16, %75, %76 : vector<32x128xi1>, vector<32x128xf32>
    %78 = arith.addf %74, %77 : vector<32x128xf32>
    %79 = arith.mulf %68, %68 : vector<32x128xf32>
    %80 = arith.mulf %78, %78 : vector<32x128xf32>
    %81 = arith.addf %79, %80 : vector<32x128xf32>
    %cst_34 = arith.constant 9.99999997E-7 : f32
    %82 = vector.broadcast %cst_34 : f32 to vector<32x128xf32>
    %83 = arith.addf %81, %82 : vector<32x128xf32>
    %84 = math.sqrt %83 : vector<32x128xf32>
    %85 = arith.subf %50, %84 : vector<32x128xf32>
    %86 = arith.mulf %85, %85 : vector<32x128xf32>
    %c16_i32 = arith.constant 16 : i32
    %87 = vector.broadcast %c16_i32 : i32 to vector<32x128xi32>
    %88 = arith.cmpi slt, %7, %87 : vector<32x128xi32>
    %c16_i32_35 = arith.constant 16 : i32
    %89 = vector.broadcast %c16_i32_35 : i32 to vector<32x128xi32>
    %90 = arith.cmpi slt, %8, %89 : vector<32x128xi32>
    %91 = arith.andi %88, %90 : vector<32x128xi1>
    %cst_36 = arith.constant 0.000000e+00 : f32
    %92 = vector.broadcast %cst_36 : f32 to vector<32x128xf32>
    %93 = arith.select %91, %86, %92 : vector<32x128xi1>, vector<32x128xf32>
    %94 = vector.shape_cast %93 : vector<32x128xf32> to vector<4x8x128xf32>
    %cst_37 = arith.constant dense<0.000000e+00> : vector<8x128xf32>
    %95 = vector.multi_reduction <add>, %94, %cst_37 [0] : vector<4x8x128xf32> to vector<8x128xf32>
    %c0_38 = arith.constant 0 : index
    %c0_39 = arith.constant 0 : index
    %c0_40 = arith.constant 0 : index
    %c0_41 = arith.constant 0 : index
    %96 = vector.load %arg4[%c0_38, %c0_39, %c0_40, %c0_41] : memref<1x1x8x128xf32, #tpu.memory_space<vmem>>, vector<1x1x8x128xf32>
    %97 = vector.shape_cast %96 : vector<1x1x8x128xf32> to vector<8x128xf32>
    %98 = vector.shape_cast %95 : vector<8x128xf32> to vector<1x1x8x128xf32>
    tpu.vector_store %arg4[%c0_38, %c0_39, %c0_40, %c0_41], %98 {strides = array<i32>} : memref<1x1x8x128xf32, #tpu.memory_space<vmem>>, vector<1x1x8x128xf32>,
    return
  }
  func.func @transform_0(%arg0: i32, %arg1: i32) -> (i32, i32, i32, i32) {
    %c1_i32 = arith.constant 1 : i32
    %0 = arith.addi %arg0, %c1_i32 : i32
    %c0_i32 = arith.constant 0 : i32
    %c0_i32_0 = arith.constant 0 : i32
    %c0_i32_1 = arith.constant 0 : i32
    return %arg1, %0, %c0_i32, %c0_i32_0 : i32, i32, i32, i32
  }
  func.func @transform_1(%arg0: i32, %arg1: i32) -> (i32, i32, i32, i32) {
    %c1_i32 = arith.constant 1 : i32
    %0 = arith.addi %arg0, %c1_i32 : i32
    %c0_i32 = arith.constant 0 : i32
    %c0_i32_0 = arith.constant 0 : i32
    %c0_i32_1 = arith.constant 0 : i32
    return %arg1, %0, %c0_i32, %c0_i32_0 : i32, i32, i32, i32
  }
  func.func @transform_2(%arg0: i32, %arg1: i32) -> (i32, i32, i32, i32) {
    %c0_i32 = arith.constant 0 : i32
    %c0_i32_0 = arith.constant 0 : i32
    %c0_i32_1 = arith.constant 0 : i32
    return %arg0, %arg1, %c0_i32, %c0_i32_0 : i32, i32, i32, i32
  }
}

</mosaic_0001>

<bundles_post_ra>
// kernel: tpu_custom_call.1
= control target key start
LH: loop header
LB: loop body
LE: loop exit
PB: predicated region body
PF: predicated region fallthrough
CT: control target
= control target key end

     0   :  { %s1559_s0 = inlined_call_operand.hbm [shape: f32[2,4,16,128], index: 0, kind: input, shape index: {}]   ;;  %s1560_s1 = inlined_call_operand.hbm [shape: f32[2,4,16,128], index: 1, kind: input, shape index: {}]   ;;  %s1561_s2 = inlined_call_operand.hbm [shape: f32[3,1,8,128], index: 2, kind: output, shape index: {}]  }
   0x1   :  { %1564 = sst [smem:[#allocation20_spill]] %s1559_s0 }
   0x2   :  { %7 = vsyncpa [#allocation3], 0 }
   0x3   :  { %9 = vsyncpa [#allocation3 + $0x1], 0 }
   0x4   :  { %10 = vsyncpa [#allocation6], 0 }
   0x5   :  { %12 = vsyncpa [#allocation6 + $0x1], 0 }
   0x6   :  { %13 = vsyncpa [#allocation4], 0 }
   0x7   :  { %15 = vsyncpa [#allocation4 + $0x1], 0  ;;  %s1042_s9 = smov 0   ;;  %s1044_s10 = smov 0  }
   0x8   :  { %s1046_s11 = smov 0   ;;  %s1048_s12 = smov 0  }
   0x9   :  { %s1050_s13 = smov 0   ;;  %s1052_s14 = smov 0  }
   0xa   :  { %s1054_s15 = smov 0   ;;  %s1056_s16 = smov 0  }
   0xb   :  { %s1058_s17 = smov 0  }
   0xc LB: > { %1565 = sst [smem:[#allocation17_spill]] %s1006_s16  ;;  %s749_s18 = sadd.s32 4294967295, %s1010_s17   ;;  %s1010_s17 = sphi %s1058_s17, %s21_s17   ;;  %s1006_s16 = sphi %s1056_s16, %s1575_s16   ;;  %s1002_s15 = sphi %s1054_s15, %s1574_s15   ;;  %s998_s14 = sphi %s1052_s14, %s1581_s14   ;;  %s994_s13 = sphi %s1050_s13, %s1580_s13   ;;  %s990_s12 = sphi %s1048_s12, %s1579_s12   ;;  %s986_s11 = sphi %s1046_s11, %s1578_s11   ;;  %s982_s10 = sphi %s1044_s10, %s1577_s10   ;;  %s978_s9 = sphi %s1042_s9, %s1576_s9  }
   0xd   : > { %s750_s19 = sadd.s32 4294967294, %s1010_s17   ;;  %s33_s20 = sadd.s32 1, %s1006_s16 }
   0xe   : > { %s44_s21 = sadd.s32 1, %s998_s14  ;;  %p35_p0 = scmp.ge.s32.totalorder %s33_s20, 3 }
   0xf   : > { %p51_p1 = scmp.ne.s32.totalorder %s998_s14, %s994_s13  ;;  %p52_p2 = scmp.eq.s32.totalorder %s1010_s17, 0 }
  0x10   : > { %p57_p3 = scmp.ne.s32.totalorder %s994_s13, %s990_s12  ;;  %p58_p5 = scmp.eq.s32.totalorder %s749_s18, 0 }
  0x11   : > { %s1093_s22 = scalar_select %p35_p0, 0, %s33_s20  }
  0x12   : > { %p1095_p4 = por %p52_p2, %p51_p1  ;;  %p1102_p6 = por %p58_p5, %p57_p3 }
  0x13   : > { %1566 = sst [smem:[#allocation18_spill]] %s1093_s22  ;;  %s38_s24 = sadd.s32 1, %s1093_s22 }
  0x14   : > { %s97_s25 = ssub.s32 %s1006_s16, %s1093_s22  ;;  %s40_s26 = ssub.s32 %s33_s20, %s38_s24 }
  0x15   : > { %p42_p7 = scmp.eq.s32.totalorder %s40_s26, 0  ;;  %p100_p8 = scmp.eq.s32.totalorder %s97_s25, 0 }
  0x16   : > { %s102_s28 = sadd.s32 1, %s986_s11  ;;  %p112_p9 = scmp.ne.s32.totalorder %s986_s11, %s982_s10 }
  0x17   : > { %s1110_s29 = scalar_select %p42_p7, %s998_s14, %s44_s21  }
  0x18   : > { %s1113_s30 = scalar_select %p100_p8, %s986_s11, %s102_s28  }
  0x19   : > { %1569 = sst [smem:[#allocation19_spill]] %s1110_s29  ;;  %p113_p10 = scmp.eq.s32.totalorder %s749_s18, 2 }
  0x1a   : > { %p118_p11 = scmp.ne.s32.totalorder %s982_s10, %s978_s9  ;;  %p119_p12 = scmp.eq.s32.totalorder %s750_s19, 2 }
  0x1b   : > { %p1117_p13 = por %p113_p10, %p112_p9  ;;  %p752_p1 = scmp.ge.s32.totalorder %s1010_s17, 3 }
  0x1c   : > { %p1121_p0 = por %p119_p12, %p118_p11 }
  0x1d   : > { %135 = sbr.rel (%p752_p1) target bundleno = 63 (0x3f), region = 16 }
  0x24   : > { %s1127_s5 = sand.u32 1, %s998_s14   ;;  %s771_s6 = sshll.u32 %s1006_s16, 8 }
  0x25   : > { %s753_s7 = sshll.u32 %s1127_s5, 5  ;;  %s1572_s0 = sld [smem:[#allocation20_spill]] }
  0x26   : > { %s773_s20 = scalar_select %p1095_p4, [#allocation0], [#allocation12] }
  0x27   : > { %s143_s21 = scalar_lea.vmem [#allocation2], %s753_s7  ;;  %s1012_s26 = smov 1024  }
  0x28   : > { %s166_s24 = sshll.u32 %s143_s21, 4  ;;  %s158_s25 = sld [smem:[%s773_s20]]   ;;  %s167_s24 = int_to_ptr.vmem [resolvable:$true] %s166_s24 }
  0x29   : > { %774 = sst [smem:[#allocation9]] (%p1095_p4), %s1012_s26  ;;  %s1013_s28 = smov 256  }
  0x2a   : > { %775 = sst [smem:[#allocation9 + $0x1]] (%p1095_p4), %s1013_s28  ;;  %s1014_s22 = smov 2  }
  0x2b   : > { %s673_s18 = scalar_lea.hbm %s1572_s0, %s771_s6  ;;  %776 = sst [smem:[#allocation9 + $0x2]] (%p1095_p4), %s1014_s22 }
  0x2c   : > { %s674_s19 = scalar_lea.hbm %s673_s18, 256  ;;  %s1015_s8 = smov 128  }
  0x2d   : > { %777 = sst [smem:[#allocation9 + $0x3]] (%p1095_p4), %s1015_s8  ;;  %s1016_s18 = smov 8  }
  0x2e   : > { %778 = sst [smem:[#allocation9 + $0x4]] (%p1095_p4), %s1015_s8  ;;  %s756_s12 = sshll.u32 %s158_s25, 26 }
  0x2f   : > { %779 = sst [smem:[#allocation9 + $0x5]] (%p1095_p4), %s1016_s18  ;;  %s757_s20 = sadd.s32 134217728, %s756_s12 }
  0x30   : > { %s140_s21 = scalar_lea.sflag [#allocation3], %s1127_s5  ;;  %s1017_s0 = smov [#allocation8]  }
  0x31   : > { %780 = dma.general (%p1095_p4), %s674_s19, 512, %s167_s24, %s140_s21, %s1017_s0, [#allocation9], %s757_s20, 0  }
  0x32   : > { %s682_s22 = scalar_lea.hbm %s1560_s1, %s771_s6  ;;  %s193_s25 = scalar_lea.vmem [#allocation5], %s753_s7 }
  0x33   : > { %s683_s8 = scalar_lea.hbm %s682_s22, 256  ;;  %s216_s16 = sshll.u32 %s193_s25, 4  ;;  %s217_s16 = int_to_ptr.vmem [resolvable:$true] %s216_s16 }
  0x34   : > { %s781_s12 = scalar_select %p1095_p4, [#allocation0], [#allocation13] }
  0x35   : > { %s1018_s29 = smov 1024   ;;  %s1019_s0 = smov 256  }
  0x36   : > { %s208_s18 = sld [smem:[%s781_s12]]   ;;  %s1020_s19 = smov 2  }
  0x37   : > { %782 = sst [smem:[#allocation11]] (%p1095_p4), %s1018_s29  ;;  %s1021_s24 = smov 128  }
  0x38   : > { %783 = sst [smem:[#allocation11 + $0x1]] (%p1095_p4), %s1019_s0  ;;  %s1022_s6 = smov 8  }
  0x39   : > { %784 = sst [smem:[#allocation11 + $0x2]] (%p1095_p4), %s1020_s19  ;;  %s190_s21 = scalar_lea.sflag [#allocation6], %s1127_s5 }
  0x3a   : > { %785 = sst [smem:[#allocation11 + $0x3]] (%p1095_p4), %s1021_s24  ;;  %s1023_s26 = smov [#allocation10]  }
  0x3b   : > { %786 = sst [smem:[#allocation11 + $0x4]] (%p1095_p4), %s1021_s24 }
  0x3c   : > { %787 = sst [smem:[#allocation11 + $0x5]] (%p1095_p4), %s1022_s6  ;;  %s761_s7 = sshll.u32 %s208_s18, 26 }
  0x3d   : > { %s762_s20 = sadd.s32 134217728, %s761_s7 }
  0x3e   : > { %788 = dma.general (%p1095_p4), %s683_s8, 512, %s217_s16, %s190_s21, %s1023_s26, [#allocation11], %s762_s20, 0  }
  0x3f PF: > { %p763_p2 = scmp.ge.s32.totalorder %s1010_s17, 1  ;;  %p237_p3 = scmp.lt.s32.totalorder %s1010_s17, 4 }
  0x41   : > { %p238_p5 = pnand %p763_p2, %p237_p3 }
  0x42   : > { %s243_s29 = sand.u32 (!%p238_p5), 1, %s994_s13  }
  0x43   : > { %241 = sbr.rel (%p238_p5) target bundleno = 307 (0x133), region = 28  ;;  %s764_s28 = sshll.u32 (!%p238_p5), %s243_s29, 5 }
  0x44   : > { %s244_s22 = scalar_lea.sflag (!%p238_p5), [#allocation3], %s243_s29  ;;  %s1174_s25 = scalar_lea.vmem (!%p238_p5), [#allocation2], %s764_s28 }
  0x4a   : > { %965 = dma.done.wait (%p1102_p6), %s244_s22, 512  }
  0x4b   : > { %967 = vsyncadd (%p1102_p6), %s244_s22, 4294966784  ;;  %s253_s16 = scalar_lea.sflag [#allocation6], %s243_s29  ;;  %s256_s23 = scalar_lea.vmem [#allocation5], %s764_s28 }
  0x4c   : > { %969 = dma.done.wait (%p1102_p6), %s253_s16, 512  }
  0x4d   : > { %971 = vsyncadd (%p1102_p6), %s253_s16, 4294966784  ;;  %v294_v0 = vlaneseq  ;;  %v1191_v3 = vld [vmem:[%s256_s23] sm:$0xff]  ;;  %v291_v4 = vld [vmem:[%s256_s23 + $0x8] sm:$0xff]  ;;  %s1024_s27 = smov 1   ;;  %s1025_s5 = smov 127  }
  0x4e   : > { %v1193_v5 = vld [vmem:[%s256_s23 + $0x18] sm:$0xff]  ;;  %v305_v6 = vrot.slane %v1191_v3, 7  ;;  %v318_v8 = vrot.slane %v1191_v3, 1  ;;  %v319_v9 = vrot.slane %v291_v4, 1  ;;  %v1202_v10 = vld [vmem:[%s1174_s25] sm:$0xff]  ;;  %v1205_v11 = vld [vmem:[%s1174_s25 + $0x8] sm:$0xff] }
  0x4f   : > { %v1185_v1 = vshrl.u32 %v294_v0, 7  ;;  %v308_v7 = vrot.slane %v1193_v5, 7  ;;  %v1208_v12 = vld [vmem:[%s1174_s25 + $0x18] sm:$0xff]  ;;  %v455_v13 = vrot.slane %v1202_v10, 7  ;;  %v467_v14 = vrot.slane %v1202_v10, 1  ;;  %v1213_v16 = vld [vmem:[%s256_s23 + $0x10] sm:$0xff] }
  0x50   : > { %v468_v15 = vrot.slane %v1205_v11, 1  ;;  %v306_v17 = vrot.slane %v291_v4, 7  ;;  %v458_v20 = vrot.slane %v1208_v12, 7  ;;  %v320_v21 = vrot.slane %v1213_v16, 1  ;;  %v1226_v22 = vld [vmem:[%s1174_s25 + $0x10] sm:$0xff]  ;;  %s279_s8 = sand.u32 1, %s982_s10  }
  0x51   : > { %v1188_v2 = vadd.s32 8, %v1185_v1  ;;  %vm299_vm0 = vcmp.ne.s32.totalorder %v1185_v1, 0  ;;  %vm309_vm1 = vcmp.lt.s32.totalorder %v1185_v1, 1  ;;  %vm322_vm2 = vcmp.lt.s32.totalorder %v1185_v1, 7  ;;  %s766_s12 = sshll.u32 %s279_s8, 3  ;;  %s768_s18 = sshll.u32 %s1002_s15, 7 }
  0x52   : > { %v313_v18 = vsel %vm309_vm1, %v308_v7, %v305_v6  ;;  %v325_v19 = vsel %vm322_vm2, %v318_v8, %v319_v9  ;;  %v473_v24 = vsel %vm322_vm2, %v467_v14, %v468_v15  ;;  %v312_v25 = vsel %vm309_vm1, %v305_v6, %v306_v17  ;;  %s281_s0 = scalar_lea.vmem [#allocation7], %s766_s12  ;;  %s1503_s7 = scalar_lea.hbm %s1561_s2, %s768_s18 }
  0x53   : > { %vm302_vm3 = vcmp.ne.s32.totalorder %v1188_v2, 15  ;;  %v314_v23 = vsel %vm299_vm0, %v313_v18, 0.0  ;;  %v456_v26 = vrot.slane %v1205_v11, 7  ;;  %v462_v28 = vsel %vm309_vm1, %v458_v20, %v455_v13  ;;  %s639_s19 = sshll.u32 %s281_s0, 4  ;;  %s625_s20 = scalar_lea.sflag [#allocation4], %s279_s8  ;;  %s1505_s19 = int_to_ptr.vmem [resolvable:$true] %s639_s19 }
  0x54   : > { %v1237_v27 = vsub.f32 %v314_v23, %v325_v19  ;;  %v324_v29 = vsel %vm322_vm2, %v319_v9, %v320_v21  ;;  %v469_v30 = vrot.slane %v1226_v22, 1  ;;  %v463_v31 = vsel %vm299_vm0, %v462_v28, 0.0  ;;  %s900_s21 = scalar_lea.vmem %s1505_s19, 128  ;;  %s1026_s15 = smov [#allocation7]  }
  0x55   : > { %v328_v32 = vsel %vm302_vm3, %v324_v29, 0.0  ;;  %v461_v33 = vsel %vm309_vm1, %v455_v13, %v456_v26  ;;  %v307_v34 = vrot.slane %v1213_v16, 7  ;;  %v1255_v35 = vsub.f32 %v463_v31, %v473_v24  ;;  %p901_p4 = scmp.ne.s32.totalorder %s1505_s19, %s900_s21  ;;  %s904_s26 = sshll.u32 %s1026_s15, 4  ;;  %s905_s26 = int_to_ptr.vmem [resolvable:$false] %s904_s26 }
  0x56   : > { %375 = vrot.lane.b32.xlu0 %v1237_v27, %s1024_s27  ;;  %v1257_v36 = vsub.f32 %v312_v25, %v328_v32  ;;  %v472_v37 = vsel %vm322_vm2, %v468_v15, %v469_v30  ;;  %v321_v38 = vrot.slane %v1193_v5, 1  ;;  %v332_v41 = vmul.f32 2.0, %v291_v4  ;;  %s906_s29 = scalar_lea.vmem %s905_s26, 256  ;;  %p907_p8 = scmp.lt.s32.totalorder %s1505_s19, %s905_s26 }
  0x57   : > { %v476_v39 = vsel %vm302_vm3, %v472_v37, 0.0  ;;  %v311_v40 = vsel %vm309_vm1, %v306_v17, %v307_v34  ;;  %v331_v42 = vmul.f32 2.0, %v1191_v3  ;;  %523 = vrot.lane.b32.xlu1 %v1255_v35, %s1024_s27  ;;  %v479_v51 = vmul.f32 2.0, %v1202_v10  ;;  %p902_p6 = pnand %p901_p4, %p1117_p13  ;;  %p908_p9 = scmp.lt.s32.totalorder %s906_s29, %s900_s21 }
  0x58   : > { %v1269_v43 = vsub.f32 %v461_v33, %v476_v39  ;;  %v316_v44 = vsel %vm299_vm0, %v311_v40, 0.0  ;;  %v323_v45 = vsel %vm322_vm2, %v320_v21, %v321_v38  ;;  %v336_v46 = vadd.f32 %v332_v41, %v312_v25 }
  0x59   : > { %v1277_v47 = vsub.f32 %v316_v44, %v323_v45  ;;  %v335_v48 = vadd.f32 %v331_v42, %v314_v23  ;;  %v480_v52 = vmul.f32 2.0, %v1205_v11  ;;  %v483_v53 = vadd.f32 %v479_v51, %v463_v31  ;;  %p903_p7 = pneg %p902_p6  ;;  %p909_p10 = por %p908_p9, %p907_p8 }
  0x5a   : > { %377 = vrot.lane.b32.xlu0 %v1257_v36, %s1024_s27  ;;  %v340_v49 = vadd.f32 %v336_v46, %v328_v32  ;;  %v457_v55 = vrot.slane %v1226_v22, 7  ;;  %v470_v57 = vrot.slane %v1208_v12, 1  ;;  %v333_v62 = vmul.f32 2.0, %v1213_v16 }
  0x5b   : > { %525 = vrot.lane.b32.xlu1 %v1269_v43, %s1024_s27  ;;  %v339_v50 = vadd.f32 %v335_v48, %v325_v19  ;;  %v484_v54 = vadd.f32 %v480_v52, %v461_v33  ;;  %v487_v56 = vadd.f32 %v483_v53, %v473_v24  ;;  %v326_v6 = vsel %vm322_vm2, %v321_v38, %v318_v8  ;;  %p910_p11 = pnand %p909_p10, %p903_p7 }
  0x5c   : > { %v460_v59 = vsel %vm309_vm1, %v456_v26, %v457_v55  ;;  %v471_v61 = vsel %vm322_vm2, %v469_v30, %v470_v57  ;;  %v337_v4 = vadd.f32 %v333_v62, %v316_v44  ;;  %v481_v11 = vmul.f32 2.0, %v1226_v22 }
  0x5d   : > { %v488_v58 = vadd.f32 %v484_v54, %v476_v39  ;;  %v465_v60 = vsel %vm299_vm0, %v460_v59, 0.0  ;;  %v310_v13 = vsel %vm309_vm1, %v307_v34, %v308_v7  ;;  %v330_v15 = vsel %vm302_vm3, %v326_v6, 0.0 }
  0x5e   : > { %379 = vrot.lane.b32.xlu0 %v1277_v47, %s1024_s27  ;;  %v1305_v63 = vsub.f32 %v465_v60, %v471_v61  ;;  %v341_v9 = vadd.f32 %v337_v4, %v323_v45  ;;  %v1326_v3 = vsub.f32 %v310_v13, %v330_v15  ;;  %v485_v8 = vadd.f32 %v481_v11, %v465_v60 }
  0x5f   : > { %349 = vrot.lane.b32.xlu1 %v340_v49, %s1024_s27  ;;  %v474_v16 = vsel %vm322_vm2, %v470_v57, %v467_v14  ;;  %v334_v17 = vmul.f32 2.0, %v1193_v5  ;;  %v459_v18 = vsel %vm309_vm1, %v457_v55, %v458_v20  ;;  %v482_v5 = vmul.f32 2.0, %v1208_v12 }
  0x60   : > { %v489_v7 = vadd.f32 %v485_v8, %v471_v61  ;;  %v478_v19 = vsel %vm302_vm3, %v474_v16, 0.0  ;;  %v1362_v12 = vand.u32 127, %v294_v0  ;;  %v387_v21 = vmul.f32 2.0, %v1237_v27 }
  0x61   : > { %v1345_v10 = vsub.f32 %v459_v18, %v478_v19  ;;  %v338_v14 = vadd.f32 %v334_v17, %v310_v13  ;;  %v486_v2 = vadd.f32 %v482_v5, %v459_v18  ;;  %v535_v23 = vmul.f32 2.0, %v1255_v35 }
  0x62   : > { %347 = vrot.lane.b32.xlu0 %v339_v50, %s1024_s27  ;;  %vm303_vm4 = vcmp.ne.s32.totalorder %v1362_v12, 0  ;;  %v388_v28 = vmul.f32 2.0, %v1257_v36  ;;  %v536_v31 = vmul.f32 2.0, %v1269_v43  ;;  %v389_v34 = vmul.f32 2.0, %v1277_v47 }
  0x63   : > { %361 = vrot.lane.b32.xlu1 %v340_v49, %s1025_s5  ;;  %v342_v1 = vadd.f32 %v338_v14, %v330_v15  ;;  %v490_v20 = vadd.f32 %v486_v2, %v478_v19  ;;  %vm304_vm5 = vcmp.ne.s32.totalorder %v1362_v12, 15  ;;  %vm613_vm7 = vcmp.lt.s32.totalorder %v1362_v12, 16 }
  0x66   : > { %359 = vrot.lane.b32.xlu0 %v339_v50, %s1025_s5 }
  0x67   : > { %395 = vrot.lane.b32.xlu1 %v1237_v27, %s1025_s5 }
  0x6a   : > { %397 = vrot.lane.b32.xlu0 %v1257_v36, %s1025_s5 }
  0x6b   : > { %495 = vrot.lane.b32.xlu1 %v487_v56, %s1024_s27 }
  0x6e   : > { %497 = vrot.lane.b32.xlu0 %v488_v58, %s1024_s27 }
  0x6f   : > { %507 = vrot.lane.b32.xlu1 %v487_v56, %s1025_s5 }
  0x72   : > { %509 = vrot.lane.b32.xlu0 %v488_v58, %s1025_s5 }
  0x73   : > { %527 = vrot.lane.b32.xlu1 %v1305_v63, %s1024_s27 }
  0x76   : > { %543 = vrot.lane.b32.xlu0 %v1255_v35, %s1025_s5 }
  0x77   : > { %545 = vrot.lane.b32.xlu1 %v1269_v43, %s1025_s5 }
  0x7a   : > { %351 = vrot.lane.b32.xlu0 %v341_v9, %s1024_s27 }
  0x7b   : > { %363 = vrot.lane.b32.xlu1 %v341_v9, %s1025_s5  ;;  %v537_v9 = vmul.f32 2.0, %v1305_v63 }
  0x7e   : > { %381 = vrot.lane.b32.xlu0 %v1326_v3, %s1024_s27 }
  0x7f   : > { %399 = vrot.lane.b32.xlu1 %v1277_v47, %s1025_s5 }
  0x82   : > { %499 = vrot.lane.b32.xlu0 %v489_v7, %s1024_s27 }
  0x83   : > { %511 = vrot.lane.b32.xlu1 %v489_v7, %s1025_s5 }
  0x86   : > { %529 = vrot.lane.b32.xlu0 %v1345_v10, %s1024_s27 }
  0x87   : > { %547 = vrot.lane.b32.xlu1 %v1305_v63, %s1025_s5 }
  0x8a   : > { %353 = vrot.lane.b32.xlu0 %v342_v1, %s1024_s27 }
  0x8b   : > { %365 = vrot.lane.b32.xlu1 %v342_v1, %s1025_s5 }
  0x8e   : > { %401 = vrot.lane.b32.xlu0 %v1326_v3, %s1025_s5 }
  0x8f   : > { %501 = vrot.lane.b32.xlu1 %v490_v20, %s1024_s27 }
  0x92   : > { %513 = vrot.lane.b32.xlu0 %v490_v20, %s1025_s5 }
  0x93   : > { %549 = vrot.lane.b32.xlu1 %v1345_v10, %s1025_s5 }
  0xc8   : > { %v376_v22 = vpop.permute.xlu0 %375 }
  0xc9   : > { %v383_v24 = vsel %vm303_vm4, %v376_v22, 0.0  ;;  %v524_v26 = vpop.permute.xlu1 %523 }
  0xca   : > { %v391_v25 = vadd.f32 %v387_v21, %v383_v24  ;;  %v531_v29 = vsel %vm303_vm4, %v524_v26, 0.0 }
  0xcb   : > { %v539_v30 = vadd.f32 %v535_v23, %v531_v29 }
  0xcc   : > { %v378_v0 = vpop.permute.xlu0 %377 }
  0xcd   : > { %v384_v27 = vsel %vm303_vm4, %v378_v0, 0.0  ;;  %v526_v33 = vpop.permute.xlu1 %525 }
  0xce   : > { %v392_v32 = vadd.f32 %v388_v28, %v384_v27  ;;  %v532_v35 = vsel %vm303_vm4, %v526_v33, 0.0 }
  0xcf   : > { %v540_v37 = vadd.f32 %v536_v31, %v532_v35 }
  0xd0   : > { %v380_v38 = vpop.permute.xlu0 %379 }
  0xd1   : > { %v385_v36 = vsel %vm303_vm4, %v380_v38, 0.0  ;;  %v350_v40 = vpop.permute.xlu1 %349 }
  0xd2   : > { %v1380_v39 = vadd.f32 %v389_v34, %v385_v36  ;;  %v356_v49 = vsel %vm303_vm4, %v350_v40, 0.0 }
  0xd4   : > { %v348_v41 = vpop.permute.xlu0 %347 }
  0xd5   : > { %v362_v42 = vpop.permute.xlu1 %361  ;;  %v355_v44 = vsel %vm303_vm4, %v348_v41, 0.0 }
  0xd6   : > { %v368_v45 = vsel %vm304_vm5, %v362_v42, 0.0 }
  0xd7   : > { %v372_v51 = vsub.f32 %v356_v49, %v368_v45 }
  0xd8   : > { %v360_v43 = vpop.permute.xlu0 %359 }
  0xd9   : > { %v367_v46 = vsel %vm304_vm5, %v360_v43, 0.0  ;;  %v396_v48 = vpop.permute.xlu1 %395  ;;  %v412_v59 = vmul.f32 %v372_v51, %v372_v51 }
  0xda   : > { %v371_v47 = vsub.f32 %v355_v44, %v367_v46  ;;  %v403_v50 = vsel %vm304_vm5, %v396_v48, 0.0 }
  0xdb   : > { %v407_v53 = vadd.f32 %v403_v50, %v391_v25  ;;  %v538_v50 = vmul.f32 2.0, %v1345_v10 }
  0xdc   : > { %v411_v52 = vmul.f32 %v371_v47, %v371_v47  ;;  %v398_v54 = vpop.permute.xlu0 %397 }
  0xdd   : > { %v404_v55 = vsel %vm304_vm5, %v398_v54, 0.0  ;;  %v415_v56 = vmul.f32 %v407_v53, %v407_v53  ;;  %v496_v58 = vpop.permute.xlu1 %495 }
  0xde   : > { %v408_v57 = vadd.f32 %v404_v55, %v392_v32  ;;  %v503_v16 = vsel %vm303_vm4, %v496_v58, 0.0 }
  0xdf   : > { %v419_v60 = vadd.f32 %v415_v56, %v411_v52 }
  0xe0   : > { %v416_v61 = vmul.f32 %v408_v57, %v408_v57  ;;  %v498_v62 = vpop.permute.xlu0 %497 }
  0xe1   : > { %v508_v6 = vpop.permute.xlu1 %507  ;;  %v1396_v13 = vadd.f32 1e-06, %v419_v60  ;;  %v504_v5 = vsel %vm303_vm4, %v498_v62, 0.0 }
  0xe2   : > { %v420_v4 = vadd.f32 %v416_v61, %v412_v59  ;;  %v515_v15 = vsel %vm304_vm5, %v508_v6, 0.0 }
  0xe3   : > { %v519_v19 = vsub.f32 %v503_v16, %v515_v15  ;;  %884 = vrsqrt.f32 %v1396_v13  ;;  %vm429_vm6 = vcmp.eq.f32.partialorder %v1396_v13, inf  ;;  %vm431_vm9 = vcmp.eq.f32.partialorder %v1396_v13, 0.0 }
  0xe4   : > { %v510_v11 = vpop.permute.xlu0 %509  ;;  %v1406_v18 = vadd.f32 1e-06, %v420_v4 }
  0xe5   : > { %v528_v8 = vpop.permute.xlu1 %527  ;;  %v516_v17 = vsel %vm304_vm5, %v510_v11, 0.0  ;;  %v559_v23 = vmul.f32 %v519_v19, %v519_v19 }
  0xe6   : > { %v533_v7 = vsel %vm303_vm4, %v528_v8, 0.0  ;;  %v520_v2 = vsub.f32 %v504_v5, %v516_v17  ;;  %886 = vrsqrt.f32 %v1406_v18  ;;  %vm436_vm8 = vcmp.eq.f32.partialorder %v1406_v18, inf }
  0xe7   : > { %v541_v63 = vadd.f32 %v537_v9, %v533_v7  ;;  %v439_v61 = vand.u32 2147483648, %v1406_v18  ;;  %vm438_vm11 = vcmp.eq.f32.partialorder %v1406_v18, 0.0 }
  0xe8   : > { %v544_v14 = vpop.permute.xlu0 %543  ;;  %v560_v28 = vmul.f32 %v520_v2, %v520_v2 }
  0xe9   : > { %v551_v1 = vsel %vm304_vm5, %v544_v14, 0.0  ;;  %v546_v20 = vpop.permute.xlu1 %545 }
  0xea   : > { %v555_v21 = vadd.f32 %v551_v1, %v539_v30  ;;  %v552_v22 = vsel %vm304_vm5, %v546_v20, 0.0  ;;  %v390_v30 = vmul.f32 2.0, %v1326_v3 }
  0xeb   : > { %v556_v24 = vadd.f32 %v552_v22, %v540_v37 }
  0xec   : > { %v563_v25 = vmul.f32 %v555_v21, %v555_v21  ;;  %v352_v26 = vpop.permute.xlu0 %351 }
  0xed   : > { %v564_v29 = vmul.f32 %v556_v24, %v556_v24  ;;  %v364_v31 = vpop.permute.xlu1 %363  ;;  %v357_v32 = vsel %vm303_vm4, %v352_v26, 0.0  ;;  %v885_v41 = vpop.eup %884 }
  0xee   : > { %v567_v0 = vadd.f32 %v563_v25, %v559_v23  ;;  %v369_v27 = vsel %vm304_vm5, %v364_v31, 0.0  ;;  %v428_v46 = vmul.f32 %v885_v41, %v1396_v13 }
  0xef   : > { %v568_v33 = vadd.f32 %v564_v29, %v560_v28  ;;  %v373_v36 = vsub.f32 %v357_v32, %v369_v27 }
  0xf0   : > { %v1421_v34 = vadd.f32 1e-06, %v567_v0  ;;  %v382_v35 = vpop.permute.xlu0 %381  ;;  %v887_v45 = vpop.eup %886  ;;  %v430_v60 = vsel %vm429_vm6, %v1396_v13, %v428_v46 }
  0xf1   : > { %v386_v37 = vsel %vm303_vm4, %v382_v35, 0.0  ;;  %v1425_v38 = vadd.f32 1e-06, %v568_v33  ;;  %v400_v40 = vpop.permute.xlu1 %399  ;;  %v413_v47 = vmul.f32 %v373_v36, %v373_v36  ;;  %v435_v55 = vmul.f32 %v887_v45, %v1406_v18 }
  0xf2   : > { %888 = vrsqrt.f32 %v1421_v34  ;;  %v405_v42 = vsel %vm304_vm5, %v400_v40, 0.0  ;;  %v394_v43 = vadd.f32 %v390_v30, %v386_v37  ;;  %vm577_vm10 = vcmp.eq.f32.partialorder %v1421_v34, inf }
  0xf3   : > { %890 = vrsqrt.f32 %v1425_v38  ;;  %v409_v3 = vadd.f32 %v405_v42, %v1380_v39  ;;  %v432_v39 = vand.u32 2147483648, %v1396_v13  ;;  %v580_v6 = vand.u32 2147483648, %v1421_v34 }
  0xf4   : > { %v500_v44 = vpop.permute.xlu0 %499  ;;  %vm584_vm12 = vcmp.eq.f32.partialorder %v1425_v38, inf  ;;  %vm579_vm13 = vcmp.eq.f32.partialorder %v1421_v34, 0.0  ;;  %v587_v2 = vand.u32 2147483648, %v1425_v38  ;;  %vm586_vm14 = vcmp.eq.f32.partialorder %v1425_v38, 0.0 }
  0xf5   : > { %v417_v48 = vmul.f32 %v409_v3, %v409_v3  ;;  %v512_v49 = vpop.permute.xlu1 %511  ;;  %v505_v52 = vsel %vm303_vm4, %v500_v44, 0.0  ;;  %v433_v16 = vsel %vm431_vm9, %v432_v39, %v430_v60 }
  0xf6   : > { %v517_v51 = vsel %vm304_vm5, %v512_v49, 0.0 }
  0xf7   : > { %v421_v53 = vadd.f32 %v417_v48, %v413_v47  ;;  %v521_v10 = vsub.f32 %v505_v52, %v517_v51 }
  0xf8   : > { %v530_v54 = vpop.permute.xlu0 %529 }
  0xf9   : > { %v534_v56 = vsel %vm303_vm4, %v530_v54, 0.0  ;;  %v1443_v57 = vadd.f32 1e-06, %v421_v53  ;;  %v548_v58 = vpop.permute.xlu1 %547  ;;  %v561_v13 = vmul.f32 %v521_v10, %v521_v10 }
  0xfa   : > { %v542_v59 = vadd.f32 %v538_v50, %v534_v56  ;;  %v553_v62 = vsel %vm304_vm5, %v548_v58, 0.0 }
  0xfb   : > { %v557_v9 = vadd.f32 %v553_v62, %v541_v63  ;;  %892 = vrsqrt.f32 %v1443_v57  ;;  %v437_v63 = vsel %vm436_vm8, %v1406_v18, %v435_v55  ;;  %vm443_vm15 = vcmp.eq.f32.partialorder %v1443_v57, inf }
  0xfc   : > { %v889_v4 = vpop.eup %888  ;;  %v354_v11 = vpop.permute.xlu0 %353  ;;  %v440_v31 = vsel %vm438_vm11, %v439_v61, %v437_v63  ;;  %v446_v55 = vand.u32 2147483648, %v1443_v57  ;;  %vm445_vm1 = vcmp.eq.f32.partialorder %v1443_v57, 0.0 }
  0xfd   : > { %v576_v15 = vmul.f32 %v889_v4, %v1421_v34  ;;  %v358_v8 = vsel %vm303_vm4, %v354_v11, 0.0  ;;  %v891_v7 = vpop.eup %890  ;;  %v565_v17 = vmul.f32 %v557_v9, %v557_v9  ;;  %v366_v19 = vpop.permute.xlu1 %365 }
  0xfe   : > { %v583_v14 = vmul.f32 %v891_v7, %v1425_v38  ;;  %v370_v5 = vsel %vm304_vm5, %v366_v19, 0.0 }
  0xff   : > { %v578_v1 = vsel %vm577_vm10, %v1421_v34, %v576_v15  ;;  %v569_v20 = vadd.f32 %v565_v17, %v561_v13  ;;  %v374_v21 = vsub.f32 %v358_v8, %v370_v5 }
 0x100   : > { %v402_v22 = vpop.permute.xlu0 %401  ;;  %v581_v23 = vsel %vm579_vm13, %v580_v6, %v578_v1  ;;  %v585_v25 = vsel %vm584_vm12, %v1425_v38, %v583_v14 }
 0x101   : > { %v406_v24 = vsel %vm304_vm5, %v402_v22, 0.0  ;;  %v603_v26 = vsub.f32 %v433_v16, %v581_v23  ;;  %v573_v28 = vadd.f32 1e-06, %v569_v20  ;;  %v502_v29 = vpop.permute.xlu1 %501  ;;  %v588_v27 = vsel %vm586_vm14, %v587_v2, %v585_v25 }
 0x102   : > { %v410_v0 = vadd.f32 %v406_v24, %v394_v43  ;;  %v604_v32 = vsub.f32 %v440_v31, %v588_v27  ;;  %v414_v33 = vmul.f32 %v374_v21, %v374_v21  ;;  %v506_v37 = vsel %vm303_vm4, %v502_v29, 0.0 }
 0x103   : > { %v607_v30 = vmul.f32 %v603_v26, %v603_v26  ;;  %894 = vrsqrt.f32 %v573_v28  ;;  %vm591_vm0 = vcmp.eq.f32.partialorder %v573_v28, inf  ;;  %v594_v56 = vand.u32 2147483648, %v573_v28 }
 0x104   : > { %v418_v34 = vmul.f32 %v410_v0, %v410_v0  ;;  %v514_v35 = vpop.permute.xlu0 %513  ;;  %v608_v36 = vmul.f32 %v604_v32, %v604_v32  ;;  %vm593_vm2 = vcmp.eq.f32.partialorder %v573_v28, 0.0 }
 0x105   : > { %v518_v38 = vsel %vm304_vm5, %v514_v35, 0.0  ;;  %v616_v40 = vsel %vm613_vm7, %v607_v30, 0.0  ;;  %v550_v18 = vpop.permute.xlu1 %549  ;;  %v893_v44 = vpop.eup %892 }
 0x106   : > { %v422_v41 = vadd.f32 %v418_v34, %v414_v33  ;;  %v522_v42 = vsub.f32 %v506_v37, %v518_v38  ;;  %v554_v43 = vsel %vm304_vm5, %v550_v18, 0.0  ;;  %v617_v3 = vsel %vm613_vm7, %v608_v36, 0.0 }
 0x107   : > { %v558_v46 = vadd.f32 %v554_v43, %v542_v59  ;;  %v620_v48 = vadd.f32 %v617_v3, %v616_v40  ;;  %v442_v50 = vmul.f32 %v893_v44, %v1443_v57 }
 0x108   : > { %v426_v45 = vadd.f32 1e-06, %v422_v41  ;;  %v562_v47 = vmul.f32 %v522_v42, %v522_v42 }
 0x109   : > { %v566_v49 = vmul.f32 %v558_v46, %v558_v46  ;;  %v444_v39 = vsel %vm443_vm15, %v1443_v57, %v442_v50 }
 0x10a   : > { %896 = vrsqrt.f32 %v426_v45  ;;  %v447_v58 = vsel %vm445_vm1, %v446_v55, %v444_v39  ;;  %vm450_vm3 = vcmp.eq.f32.partialorder %v426_v45, inf  ;;  %v453_v57 = vand.u32 2147483648, %v426_v45 }
 0x10b   : > { %v570_v51 = vadd.f32 %v566_v49, %v562_v47  ;;  %vm452_vm5 = vcmp.eq.f32.partialorder %v426_v45, 0.0 }
 0x10d   : > { %v895_v52 = vpop.eup %894  ;;  %v574_v53 = vadd.f32 1e-06, %v570_v51 }
 0x10e   : > { %v590_v54 = vmul.f32 %v895_v52, %v573_v28 }
 0x10f   : > { %898 = vrsqrt.f32 %v574_v53  ;;  %vm598_vm4 = vcmp.eq.f32.partialorder %v574_v53, inf  ;;  %v601_v16 = vand.u32 2147483648, %v574_v53  ;;  %vm600_vm6 = vcmp.eq.f32.partialorder %v574_v53, 0.0 }
 0x110   : > { %v592_v10 = vsel %vm591_vm0, %v573_v28, %v590_v54 }
 0x111   : > { %v595_v59 = vsel %vm593_vm2, %v594_v56, %v592_v10 }
 0x112   : > { %v605_v60 = vsub.f32 %v447_v58, %v595_v59 }
 0x114   : > { %v897_v61 = vpop.eup %896  ;;  %v609_v62 = vmul.f32 %v605_v60, %v605_v60 }
 0x115   : > { %v449_v4 = vmul.f32 %v897_v61, %v426_v45 }
 0x116   : > { %v618_v6 = vsel %vm613_vm7, %v609_v62, 0.0 }
 0x117   : > { %v621_v9 = vadd.f32 %v620_v48, %v618_v6  ;;  %v451_v15 = vsel %vm450_vm3, %v426_v45, %v449_v4 }
 0x118   : > { %v454_v13 = vsel %vm452_vm5, %v453_v57, %v451_v15 }
 0x119   : > { %v899_v11 = vpop.eup %898 }
 0x11a   : > { %v597_v8 = vmul.f32 %v899_v11, %v574_v53 }
 0x11c   : > { %v599_v7 = vsel %vm598_vm4, %v574_v53, %v597_v8 }
 0x11d   : > { %v602_v17 = vsel %vm600_vm6, %v601_v16, %v599_v7 }
 0x11e   : > { %v606_v19 = vsub.f32 %v454_v13, %v602_v17 }
 0x120   : > { %v610_v63 = vmul.f32 %v606_v19, %v606_v19 }
 0x122   : > { %v619_v14 = vsel %vm613_vm7, %v610_v63, 0.0 }
 0x123   : > { %v622_v5 = vadd.f32 %v621_v9, %v619_v14 }
 0x125   : > { %623 = vst [vmem:[%s281_s0] sm:$0xff] %v622_v5 }
 0x126   : > { %913 = shalt.err (!%p910_p11)
}
 0x127   : > { %s914_s28 = scalar_lea.hbm %s1503_s7, 128  ;;  %s918_s16 = scalar_lea.hbm %s1561_s2, 384 }
 0x128   : > { %p915_p12 = scmp.ne.s32.totalorder %s1503_s7, %s914_s28  ;;  %p919_p3 = scmp.lt.u32.totalorder %s1503_s7, %s1561_s2 }
 0x129   : > { %p920_p5 = scmp.lt.u32.totalorder %s918_s16, %s914_s28  ;;  %p922_p6 = scmp.lt.u32.totalorder %s914_s28, %s1503_s7 }
 0x12a   : > { %p916_p1 = pnand %p915_p12, %p1117_p13 }
 0x12b   : > { %p921_p4 = por %p920_p5, %p919_p3 }
 0x12c   : > { %p917_p2 = pneg %p916_p1 }
 0x12d   : > { %p923_p7 = por %p922_p6, %p921_p4 }
 0x12f   : > { %p924_p8 = pnand %p923_p7, %p917_p2 }
 0x131   : > { %927 = shalt.err (!%p924_p8)
}
 0x132   : > { %791 = dma.vmem_to_hbm [thread:$0]  (%p1117_p13), %s1505_s19, 128, %s1503_s7, %s625_s20  }
 0x133 PF: > { %p797_p9 = scmp.ge.s32.totalorder %s1010_s17, 2  ;;  %s651_s5 = sand.u32 1, %s978_s9  }
 0x134   : > { %s652_s8 = scalar_lea.sflag [#allocation4], %s651_s5 }
 0x135   : > { %p794_p10 = pnand %p797_p9, %p1121_p0 }
 0x137   : > { %973 = dma.done.wait (!%p794_p10), %s652_s8, 128  }
 0x138   : > { %975 = vsyncadd (!%p794_p10), %s652_s8, 4294967168  ;;  %s21_s17 = sadd.s32 1, %s1010_s17   ;;  %s1573_s3 = sld [smem:[#allocation19_spill]] }
 0x139   : > { %p18_p11 = scmp.ge.s32.totalorder %s21_s17, 5   ;;  %s1574_s15 = sld [smem:[#allocation17_spill]] }
 0x13a   : > { %s1575_s16 = sld [smem:[#allocation18_spill]]  ;;  %s1576_s9 = smov %s982_s10 }
 0x13b   : > { %s1577_s10 = smov %s986_s11  ;;  %s1578_s11 = smov %s1113_s30 }
 0x13c   : > { %s1579_s12 = smov %s994_s13  ;;  %s1580_s13 = smov %s998_s14 }
 0x13d   :  { %20 = sbr.rel (!%p18_p11) target bundleno = 12 (0xc), region = 96 }
 0x13e   : > { %s1581_s14 = smov %s1573_s3 }
 0x144   :  { %657 = vsyncpa [#allocation3], 1 }
 0x145   :  { %659 = vsyncpa [#allocation3 + $0x1], 1 }
 0x146   :  { %660 = vsyncpa [#allocation6], 1 }
 0x147   :  { %662 = vsyncpa [#allocation6 + $0x1], 1 }
 0x148   :  { %663 = vsyncpa [#allocation4], 1 }
 0x149   :  { %665 = vsyncpa [#allocation4 + $0x1], 1 }

</bundles_post_ra>
